<compile_context>
chip_gen: v5e
topology: v5e:2x2
jax: 0.10.0
libtpu: 0.0.40
codegen_flags: <defaults>
</compile_context>

<pallas_src>
import functools

import numpy as np

import jax
import jax.numpy as jnp
from jax import lax
from jax.experimental import pallas as pl
from jax.experimental.pallas import tpu as pltpu


def _leaky_relu(x):
    return jnp.where(x > 0, x, 0.2 * x)


def _round_up(x, m):
    return (x + m - 1) // m * m


def _pick_batch_block(n):
    """Images per grid step: as large as possible (<=8) while keeping the grid
    length >= 2 (and preferably even) so dimension_semantics=("parallel",) can
    load-balance across two TensorCores on v7x."""
    for want_even in (True, False):
        for b in (8, 4, 2):
            if n % b == 0 and n // b >= 2 and (not want_even or (n // b) % 2 == 0):
                return b
    return 1


def _tap_masks(H, W, crep):
    """(9, crep, H*W) f32 boundary masks (1 inside, 0 where a 3x3 tap would
    read across the zero-padded image border).  Computed once on the host."""
    HW = H * W
    lane = np.arange(HW)
    prow, pcol = lane // W, lane % W
    out = np.empty((9, crep, HW), np.float32)
    for t in range(9):
        ky, kx = divmod(t, 3)
        dy, dx = ky - 1, kx - 1
        m = np.ones(HW, dtype=bool)
        if dy == -1:
            m &= prow >= 1
        if dy == 1:
            m &= prow <= H - 2
        if dx == -1:
            m &= pcol >= 1
        if dx == 1:
            m &= pcol <= W - 2
        out[t] = np.broadcast_to(m.astype(np.float32), (crep, HW))
    return out


def _pack_conv3x3(w, cin_pad, cout_pad, scale=1.0):
    """PyTorch (O, C, 3, 3) conv weight -> (cout_pad, 9*cin_pad), tap-major /
    channel-minor, zero-padded, with `scale` folded in."""
    O, C = w.shape[0], w.shape[1]
    wt = jnp.transpose(w.astype(jnp.float32), (0, 2, 3, 1)).reshape(O, 9, C)
    wt = jnp.pad(wt, ((0, cout_pad - O), (0, 0), (0, cin_pad - C)))
    return (scale * wt).reshape(cout_pad, 9 * cin_pad)


def _resnet_block_kernel(*refs, H, W, B, learned_shortcut):
    if learned_shortcut:
        (x_ref, w0_ref, b0_ref, w1_ref, b1_ref, m_ref, ws_ref, out_ref) = refs
    else:
        (x_ref, w0_ref, b0_ref, w1_ref, b1_ref, m_ref, out_ref) = refs
        ws_ref = None

    HW = H * W
    Cout = out_ref.shape[1]

    # Resident constants: loaded once per grid step, reused for all B images.
    w0 = w0_ref[...]                       # (chid_p, 9*cin_p)
    b0 = b0_ref[...]                       # (chid_p, 1)
    w1 = w1_ref[...]                       # (Cout, 9*chid_p)
    b1 = b1_ref[...]                       # (Cout, 1)
    ws = ws_ref[...] if learned_shortcut else None
    masks = [None if t == 4 else m_ref[t] for t in range(9)]   # (cpad, HW) each

    def packed_taps(a):
        # a: (Cpad, HW) -> (9*Cpad, HW) packed im2col, built fully in
        # registers (tile-aligned sublane concat; no VMEM scratch).
        C = a.shape[0]
        rows = []
        for t in range(9):
            ky, kx = divmod(t, 3)
            s = (ky - 1) * W + (kx - 1)            # source offset of this tap
            v = a if s == 0 else pltpu.roll(a, shift=(-s) % HW, axis=1)
            if t != 4:
                m = masks[t]
                if m.shape[0] != C:
                    m = m[:C, :]
                v = v * m
            rows.append(v)
        return jnp.concatenate(rows, axis=0)

    for b in range(B):                             # static unroll over the block
        x = x_ref[b]                               # (cin_p, HW), lane-dense

        # actvn -> packed im2col -> conv_0 (one MXU matmul) + bias
        a0 = _leaky_relu(x)
        h = jnp.dot(w0, packed_taps(a0),
                    preferred_element_type=jnp.float32) + b0

        # actvn -> packed im2col -> conv_1; 0.1 residual scale folded in w1/b1
        a1 = _leaky_relu(h)
        dx = jnp.dot(w1, packed_taps(a1),
                     preferred_element_type=jnp.float32) + b1

        # Shortcut: learned 1x1 conv, or identity (no matmul) when fin == fout.
        if learned_shortcut:
            xs = jnp.dot(ws, x, preferred_element_type=jnp.float32)
        else:
            xs = x[:Cout, :]

        out_ref[b] = (xs + dx).astype(out_ref.dtype)


def resnet_block_pallas(x_nchw, w0, b0, w1, b1, ws=None):
    """x_nchw: (N, Cin, H, W). Weights in PyTorch layout:
       w0: (Chid, Cin, 3, 3), b0: (Chid,), w1: (Cout, Chid, 3, 3), b1: (Cout,),
       ws: (Cout, Cin, 1, 1) or None for the identity shortcut (fin == fout)."""
    N, Cin, H, W = x_nchw.shape
    Chid = w0.shape[0]
    Cout = w1.shape[0]
    HW = H * W
    learned = ws is not None

    cin_p = _round_up(Cin, 8)
    chid_p = _round_up(Chid, 8)
    cpad_max = max(cin_p, chid_p)

    B = _pick_batch_block(N)
    grid = (N // B,)

    # NCHW -> (N, cin_p, H*W): contiguous reshape + zero channel pad only.
    xf = jnp.pad(x_nchw.reshape(N, Cin, HW).astype(jnp.float32),
                 ((0, 0), (0, cin_p - Cin), (0, 0)))

    w0p = _pack_conv3x3(w0, cin_p, chid_p)                  # (chid_p, 9*cin_p)
    w1p = _pack_conv3x3(w1, chid_p, Cout, scale=0.1)        # (Cout, 9*chid_p)
    b0c = jnp.pad(b0.astype(jnp.float32), (0, chid_p - Chid)).reshape(chid_p, 1)
    b1c = (0.1 * b1.astype(jnp.float32)).reshape(Cout, 1)
    mask = jnp.asarray(_tap_masks(H, W, cpad_max))          # (9, cpad_max, HW)

    inputs = [xf, w0p, b0c, w1p, b1c, mask]
    in_specs = [
        pl.BlockSpec((B, cin_p, HW), lambda n: (n, 0, 0)),
        pl.BlockSpec((chid_p, 9 * cin_p), lambda n: (0, 0)),
        pl.BlockSpec((chid_p, 1), lambda n: (0, 0)),
        pl.BlockSpec((Cout, 9 * chid_p), lambda n: (0, 0)),
        pl.BlockSpec((Cout, 1), lambda n: (0, 0)),
        pl.BlockSpec((9, cpad_max, HW), lambda n: (0, 0, 0)),
    ]
    if learned:
        wsp = jnp.pad(ws[:, :, 0, 0].astype(jnp.float32),
                      ((0, 0), (0, cin_p - Cin)))           # (Cout, cin_p)
        inputs.append(wsp)
        in_specs.append(pl.BlockSpec((Cout, cin_p), lambda n: (0, 0)))

    kernel = functools.partial(_resnet_block_kernel, H=H, W=W, B=B,
                               learned_shortcut=learned)

    out = pl.pallas_call(
        kernel,
        out_shape=jax.ShapeDtypeStruct((N, Cout, HW), jnp.float32),
        grid=grid,
        in_specs=in_specs,
        out_specs=pl.BlockSpec((B, Cout, HW), lambda n: (n, 0, 0)),
        compiler_params=pltpu.CompilerParams(
            dimension_semantics=("parallel",)),
    )(*inputs)

    return out.reshape(N, Cout, H, W)


def resnet_block_reference(x, w0, b0, w1, b1, ws=None):
    """Pure-JAX NCHW reference matching the PyTorch module."""
    dn = ("NCHW", "OIHW", "NCHW")

    def conv(z, w, pad):
        return lax.conv_general_dilated(z, w, window_strides=(1, 1),
                                        padding=[(pad, pad), (pad, pad)],
                                        dimension_numbers=dn)

    x_s = conv(x, ws, 0) if ws is not None else x
    dx = conv(_leaky_relu(x), w0, 1) + b0.reshape(1, -1, 1, 1)
    dx = conv(_leaky_relu(dx), w1, 1) + b1.reshape(1, -1, 1, 1)
    return x_s + 0.1 * dx


def _make_params(key, fin, fout, fhidden):
    k0, kb0, k1, kb1, ks = jax.random.split(key, 5)
    w0 = jax.random.normal(k0, (fhidden, fin, 3, 3), jnp.float32) * 0.1
    b0 = jax.random.normal(kb0, (fhidden,), jnp.float32) * 0.1
    w1 = jax.random.normal(k1, (fout, fhidden, 3, 3), jnp.float32) * 0.1
    b1 = jax.random.normal(kb1, (fout,), jnp.float32) * 0.1
    ws = (jax.random.normal(ks, (fout, fin, 1, 1), jnp.float32) * 0.1
          if fin != fout else None)
    return w0, b0, w1, b1, ws


def _check(x, w0, b0, w1, b1, ws, fout):
    out = jax.block_until_ready(resnet_block_pallas(x, w0, b0, w1, b1, ws))
    ref = resnet_block_reference(x, w0, b0, w1, b1, ws)
    assert out.shape == (x.shape[0], fout, x.shape[2], x.shape[3])
    assert jnp.allclose(out, ref, rtol=1e-4, atol=1e-4), \
        f"max abs err {jnp.max(jnp.abs(out - ref))}"


if __name__ == "__main__":
    H, W = 16, 16
    key = jax.random.PRNGKey(0)
    kx1, kp1, kx2, kp2, kx3, kp3 = jax.random.split(key, 6)

    # Config 1: N=2, fin=4 -> fout=8 (learned 1x1 shortcut), B=1, grid=2.
    fin, fout = 4, 8
    fhidden = min(fin, fout)
    x = jax.random.normal(kx1, (2, fin, H, W), jnp.float32)
    w0, b0, w1, b1, ws = _make_params(kp1, fin, fout, fhidden)
    _check(x, w0, b0, w1, b1, ws, fout)

    # Config 2: N=2, fin == fout == 4 (identity shortcut, no 1x1 matmul).
    fin = fout = 4
    fhidden = min(fin, fout)
    x2 = jax.random.normal(kx2, (2, fin, H, W), jnp.float32)
    w0, b0, w1, b1, _ = _make_params(kp2, fin, fout, fhidden)
    _check(x2, w0, b0, w1, b1, None, fout)

    # Config 3: N=4, fin=4 -> fout=8 — exercises the batched path (B=2, grid=2).
    fin, fout = 4, 8
    fhidden = min(fin, fout)
    x3 = jax.random.normal(kx3, (4, fin, H, W), jnp.float32)
    w0, b0, w1, b1, ws = _make_params(kp3, fin, fout, fhidden)
    _check(x3, w0, b0, w1, b1, ws, fout)

    print("KERNEL_OK")
</pallas_src>

<mosaic_0001>
module attributes {stable_mosaic.version = 11 : i64} {
  func.func @_resnet_block_kernel(%arg0: i32, %arg1: memref<1x8x256xf32, #tpu.memory_space<vmem>>, %arg2: memref<8x72xf32, #tpu.memory_space<vmem>>, %arg3: memref<8x1xf32, #tpu.memory_space<vmem>>, %arg4: memref<8x72xf32, #tpu.memory_space<vmem>>, %arg5: memref<8x1xf32, #tpu.memory_space<vmem>>, %arg6: memref<9x8x256xf32, #tpu.memory_space<vmem>>, %arg7: memref<8x8xf32, #tpu.memory_space<vmem>>, %arg8: memref<1x8x256xf32, #tpu.memory_space<vmem>>) attributes {dimension_semantics = [#tpu.dimension_semantics<parallel>], iteration_bounds = array<i64: 2>, scalar_prefetch = 0 : i64, scratch_operands = 0 : i64, tpu.core_type = #tpu.core_type<tc>, window_params = [{transform_indices = @transform_0, window_bounds = array<i64: 1, 8, 256>}, {pipeline_mode = #tpu.pipeline_mode<synchronous>, transform_indices = @transform_1, window_bounds = array<i64: 8, 72>}, {pipeline_mode = #tpu.pipeline_mode<synchronous>, transform_indices = @transform_2, window_bounds = array<i64: 8, 1>}, {pipeline_mode = #tpu.pipeline_mode<synchronous>, transform_indices = @transform_3, window_bounds = array<i64: 8, 72>}, {pipeline_mode = #tpu.pipeline_mode<synchronous>, transform_indices = @transform_4, window_bounds = array<i64: 8, 1>}, {pipeline_mode = #tpu.pipeline_mode<synchronous>, transform_indices = @transform_5, window_bounds = array<i64: 9, 8, 256>}, {pipeline_mode = #tpu.pipeline_mode<synchronous>, transform_indices = @transform_6, window_bounds = array<i64: 8, 8>}, {transform_indices = @transform_7, window_bounds = array<i64: 1, 8, 256>}]} {
    %c0 = arith.constant 0 : index
    %c0_0 = arith.constant 0 : index
    %0 = vector.load %arg2[%c0, %c0_0] : memref<8x72xf32, #tpu.memory_space<vmem>>, vector<8x72xf32>
    %c0_1 = arith.constant 0 : index
    %c0_2 = arith.constant 0 : index
    %1 = vector.load %arg3[%c0_1, %c0_2] : memref<8x1xf32, #tpu.memory_space<vmem>>, vector<8x1xf32>
    %c0_3 = arith.constant 0 : index
    %c0_4 = arith.constant 0 : index
    %2 = vector.load %arg4[%c0_3, %c0_4] : memref<8x72xf32, #tpu.memory_space<vmem>>, vector<8x72xf32>
    %c0_5 = arith.constant 0 : index
    %c0_6 = arith.constant 0 : index
    %3 = vector.load %arg5[%c0_5, %c0_6] : memref<8x1xf32, #tpu.memory_space<vmem>>, vector<8x1xf32>
    %c0_7 = arith.constant 0 : index
    %c0_8 = arith.constant 0 : index
    %4 = vector.load %arg7[%c0_7, %c0_8] : memref<8x8xf32, #tpu.memory_space<vmem>>, vector<8x8xf32>
    %c0_9 = arith.constant 0 : index
    %c0_10 = arith.constant 0 : index
    %c0_11 = arith.constant 0 : index
    %5 = vector.load %arg6[%c0_9, %c0_10, %c0_11] : memref<9x8x256xf32, #tpu.memory_space<vmem>>, vector<1x8x256xf32>
    %6 = vector.shape_cast %5 : vector<1x8x256xf32> to vector<8x256xf32>
    %c1 = arith.constant 1 : index
    %c0_12 = arith.constant 0 : index
    %c0_13 = arith.constant 0 : index
    %7 = vector.load %arg6[%c1, %c0_12, %c0_13] : memref<9x8x256xf32, #tpu.memory_space<vmem>>, vector<1x8x256xf32>
    %8 = vector.shape_cast %7 : vector<1x8x256xf32> to vector<8x256xf32>
    %c2 = arith.constant 2 : index
    %c0_14 = arith.constant 0 : index
    %c0_15 = arith.constant 0 : index
    %9 = vector.load %arg6[%c2, %c0_14, %c0_15] : memref<9x8x256xf32, #tpu.memory_space<vmem>>, vector<1x8x256xf32>
    %10 = vector.shape_cast %9 : vector<1x8x256xf32> to vector<8x256xf32>
    %c3 = arith.constant 3 : index
    %c0_16 = arith.constant 0 : index
    %c0_17 = arith.constant 0 : index
    %11 = vector.load %arg6[%c3, %c0_16, %c0_17] : memref<9x8x256xf32, #tpu.memory_space<vmem>>, vector<1x8x256xf32>
    %12 = vector.shape_cast %11 : vector<1x8x256xf32> to vector<8x256xf32>
    %c5 = arith.constant 5 : index
    %c0_18 = arith.constant 0 : index
    %c0_19 = arith.constant 0 : index
    %13 = vector.load %arg6[%c5, %c0_18, %c0_19] : memref<9x8x256xf32, #tpu.memory_space<vmem>>, vector<1x8x256xf32>
    %14 = vector.shape_cast %13 : vector<1x8x256xf32> to vector<8x256xf32>
    %c6 = arith.constant 6 : index
    %c0_20 = arith.constant 0 : index
    %c0_21 = arith.constant 0 : index
    %15 = vector.load %arg6[%c6, %c0_20, %c0_21] : memref<9x8x256xf32, #tpu.memory_space<vmem>>, vector<1x8x256xf32>
    %16 = vector.shape_cast %15 : vector<1x8x256xf32> to vector<8x256xf32>
    %c7 = arith.constant 7 : index
    %c0_22 = arith.constant 0 : index
    %c0_23 = arith.constant 0 : index
    %17 = vector.load %arg6[%c7, %c0_22, %c0_23] : memref<9x8x256xf32, #tpu.memory_space<vmem>>, vector<1x8x256xf32>
    %18 = vector.shape_cast %17 : vector<1x8x256xf32> to vector<8x256xf32>
    %c8 = arith.constant 8 : index
    %c0_24 = arith.constant 0 : index
    %c0_25 = arith.constant 0 : index
    %19 = vector.load %arg6[%c8, %c0_24, %c0_25] : memref<9x8x256xf32, #tpu.memory_space<vmem>>, vector<1x8x256xf32>
    %20 = vector.shape_cast %19 : vector<1x8x256xf32> to vector<8x256xf32>
    %c0_26 = arith.constant 0 : index
    %c0_27 = arith.constant 0 : index
    %c0_28 = arith.constant 0 : index
    %21 = vector.load %arg1[%c0_26, %c0_27, %c0_28] : memref<1x8x256xf32, #tpu.memory_space<vmem>>, vector<1x8x256xf32>
    %22 = vector.shape_cast %21 : vector<1x8x256xf32> to vector<8x256xf32>
    %cst = arith.constant 0.000000e+00 : f32
    %23 = vector.broadcast %cst : f32 to vector<8x256xf32>
    %24 = arith.cmpf ogt, %22, %23 : vector<8x256xf32>
    %cst_29 = arith.constant 2.000000e-01 : f32
    %25 = vector.broadcast %cst_29 : f32 to vector<8x256xf32>
    %26 = arith.mulf %25, %22 : vector<8x256xf32>
    %27 = arith.select %24, %22, %26 : vector<8x256xi1>, vector<8x256xf32>
    %c17_i32 = arith.constant 17 : i32
    %28 = tpu.dynamic_rotate %27 by %c17_i32 dim 1 : vector<8x256xf32>, i32 -> vector<8x256xf32>
    %29 = arith.mulf %28, %6 : vector<8x256xf32>
    %c16_i32 = arith.constant 16 : i32
    %30 = tpu.dynamic_rotate %27 by %c16_i32 dim 1 : vector<8x256xf32>, i32 -> vector<8x256xf32>
    %31 = arith.mulf %30, %8 : vector<8x256xf32>
    %c15_i32 = arith.constant 15 : i32
    %32 = tpu.dynamic_rotate %27 by %c15_i32 dim 1 : vector<8x256xf32>, i32 -> vector<8x256xf32>
    %33 = arith.mulf %32, %10 : vector<8x256xf32>
    %c1_i32 = arith.constant 1 : i32
    %34 = tpu.dynamic_rotate %27 by %c1_i32 dim 1 : vector<8x256xf32>, i32 -> vector<8x256xf32>
    %35 = arith.mulf %34, %12 : vector<8x256xf32>
    %c255_i32 = arith.constant 255 : i32
    %36 = tpu.dynamic_rotate %27 by %c255_i32 dim 1 : vector<8x256xf32>, i32 -> vector<8x256xf32>
    %37 = arith.mulf %36, %14 : vector<8x256xf32>
    %c241_i32 = arith.constant 241 : i32
    %38 = tpu.dynamic_rotate %27 by %c241_i32 dim 1 : vector<8x256xf32>, i32 -> vector<8x256xf32>
    %39 = arith.mulf %38, %16 : vector<8x256xf32>
    %c240_i32 = arith.constant 240 : i32
    %40 = tpu.dynamic_rotate %27 by %c240_i32 dim 1 : vector<8x256xf32>, i32 -> vector<8x256xf32>
    %41 = arith.mulf %40, %18 : vector<8x256xf32>
    %c239_i32 = arith.constant 239 : i32
    %42 = tpu.dynamic_rotate %27 by %c239_i32 dim 1 : vector<8x256xf32>, i32 -> vector<8x256xf32>
    %43 = arith.mulf %42, %20 : vector<8x256xf32>
    %44 = tpu.concatenate %29, %31, %33, %35, %27, %37, %39, %41, %43 in 0 : vector<8x256xf32>, vector<8x256xf32>, vector<8x256xf32>, vector<8x256xf32>, vector<8x256xf32>, vector<8x256xf32>, vector<8x256xf32>, vector<8x256xf32>, vector<8x256xf32> -> vector<72x256xf32>
    %cst_30 = arith.constant dense<0.000000e+00> : vector<8x256xf32>
    %45 = tpu.matmul %0, %44, %cst_30 {dimension_numbers = #tpu.dot_dimension_numbers<[1], [0], [0], [1], [0, 0, 1, 1], [], []>} : vector<8x72xf32>, vector<72x256xf32>, vector<8x256xf32> -> vector<8x256xf32>
    %46 = vector.broadcast %1 : vector<8x1xf32> to vector<8x256xf32>
    %47 = arith.addf %45, %46 : vector<8x256xf32>
    %cst_31 = arith.constant 0.000000e+00 : f32
    %48 = vector.broadcast %cst_31 : f32 to vector<8x256xf32>
    %49 = arith.cmpf ogt, %47, %48 : vector<8x256xf32>
    %cst_32 = arith.constant 2.000000e-01 : f32
    %50 = vector.broadcast %cst_32 : f32 to vector<8x256xf32>
    %51 = arith.mulf %50, %47 : vector<8x256xf32>
    %52 = arith.select %49, %47, %51 : vector<8x256xi1>, vector<8x256xf32>
    %c17_i32_33 = arith.constant 17 : i32
    %53 = tpu.dynamic_rotate %52 by %c17_i32_33 dim 1 : vector<8x256xf32>, i32 -> vector<8x256xf32>
    %54 = arith.mulf %53, %6 : vector<8x256xf32>
    %c16_i32_34 = arith.constant 16 : i32
    %55 = tpu.dynamic_rotate %52 by %c16_i32_34 dim 1 : vector<8x256xf32>, i32 -> vector<8x256xf32>
    %56 = arith.mulf %55, %8 : vector<8x256xf32>
    %c15_i32_35 = arith.constant 15 : i32
    %57 = tpu.dynamic_rotate %52 by %c15_i32_35 dim 1 : vector<8x256xf32>, i32 -> vector<8x256xf32>
    %58 = arith.mulf %57, %10 : vector<8x256xf32>
    %c1_i32_36 = arith.constant 1 : i32
    %59 = tpu.dynamic_rotate %52 by %c1_i32_36 dim 1 : vector<8x256xf32>, i32 -> vector<8x256xf32>
    %60 = arith.mulf %59, %12 : vector<8x256xf32>
    %c255_i32_37 = arith.constant 255 : i32
    %61 = tpu.dynamic_rotate %52 by %c255_i32_37 dim 1 : vector<8x256xf32>, i32 -> vector<8x256xf32>
    %62 = arith.mulf %61, %14 : vector<8x256xf32>
    %c241_i32_38 = arith.constant 241 : i32
    %63 = tpu.dynamic_rotate %52 by %c241_i32_38 dim 1 : vector<8x256xf32>, i32 -> vector<8x256xf32>
    %64 = arith.mulf %63, %16 : vector<8x256xf32>
    %c240_i32_39 = arith.constant 240 : i32
    %65 = tpu.dynamic_rotate %52 by %c240_i32_39 dim 1 : vector<8x256xf32>, i32 -> vector<8x256xf32>
    %66 = arith.mulf %65, %18 : vector<8x256xf32>
    %c239_i32_40 = arith.constant 239 : i32
    %67 = tpu.dynamic_rotate %52 by %c239_i32_40 dim 1 : vector<8x256xf32>, i32 -> vector<8x256xf32>
    %68 = arith.mulf %67, %20 : vector<8x256xf32>
    %69 = tpu.concatenate %54, %56, %58, %60, %52, %62, %64, %66, %68 in 0 : vector<8x256xf32>, vector<8x256xf32>, vector<8x256xf32>, vector<8x256xf32>, vector<8x256xf32>, vector<8x256xf32>, vector<8x256xf32>, vector<8x256xf32>, vector<8x256xf32> -> vector<72x256xf32>
    %cst_41 = arith.constant dense<0.000000e+00> : vector<8x256xf32>
    %70 = tpu.matmul %2, %69, %cst_41 {dimension_numbers = #tpu.dot_dimension_numbers<[1], [0], [0], [1], [0, 0, 1, 1], [], []>} : vector<8x72xf32>, vector<72x256xf32>, vector<8x256xf32> -> vector<8x256xf32>
    %71 = vector.broadcast %3 : vector<8x1xf32> to vector<8x256xf32>
    %72 = arith.addf %70, %71 : vector<8x256xf32>
    %cst_42 = arith.constant dense<0.000000e+00> : vector<8x256xf32>
    %73 = tpu.matmul %4, %22, %cst_42 {dimension_numbers = #tpu.dot_dimension_numbers<[1], [0], [0], [1], [0, 0, 1, 1], [], []>} : vector<8x8xf32>, vector<8x256xf32>, vector<8x256xf32> -> vector<8x256xf32>
    %74 = arith.addf %73, %72 : vector<8x256xf32>
    %c0_43 = arith.constant 0 : index
    %c0_44 = arith.constant 0 : index
    %c0_45 = arith.constant 0 : index
    %75 = vector.load %arg8[%c0_43, %c0_44, %c0_45] : memref<1x8x256xf32, #tpu.memory_space<vmem>>, vector<1x8x256xf32>
    %76 = vector.shape_cast %75 : vector<1x8x256xf32> to vector<8x256xf32>
    %77 = vector.shape_cast %74 : vector<8x256xf32> to vector<1x8x256xf32>
    tpu.vector_store %arg8[%c0_43, %c0_44, %c0_45], %77 {strides = array<i32>} : memref<1x8x256xf32, #tpu.memory_space<vmem>>, vector<1x8x256xf32>,
    return
  }
  func.func @transform_0(%arg0: i32) -> (i32, i32, i32) {
    %c0_i32 = arith.constant 0 : i32
    %c0_i32_0 = arith.constant 0 : i32
    %c0_i32_1 = arith.constant 0 : i32
    return %arg0, %c0_i32, %c0_i32_0 : i32, i32, i32
  }
  func.func @transform_1(%arg0: i32) -> (i32, i32) {
    %c0_i32 = arith.constant 0 : i32
    %c0_i32_0 = arith.constant 0 : i32
    %c0_i32_1 = arith.constant 0 : i32
    return %c0_i32, %c0_i32_0 : i32, i32
  }
  func.func @transform_2(%arg0: i32) -> (i32, i32) {
    %c0_i32 = arith.constant 0 : i32
    %c0_i32_0 = arith.constant 0 : i32
    %c0_i32_1 = arith.constant 0 : i32
    return %c0_i32, %c0_i32_0 : i32, i32
  }
  func.func @transform_3(%arg0: i32) -> (i32, i32) {
    %c0_i32 = arith.constant 0 : i32
    %c0_i32_0 = arith.constant 0 : i32
    %c0_i32_1 = arith.constant 0 : i32
    return %c0_i32, %c0_i32_0 : i32, i32
  }
  func.func @transform_4(%arg0: i32) -> (i32, i32) {
    %c0_i32 = arith.constant 0 : i32
    %c0_i32_0 = arith.constant 0 : i32
    %c0_i32_1 = arith.constant 0 : i32
    return %c0_i32, %c0_i32_0 : i32, i32
  }
  func.func @transform_5(%arg0: i32) -> (i32, i32, i32) {
    %c0_i32 = arith.constant 0 : i32
    %c0_i32_0 = arith.constant 0 : i32
    %c0_i32_1 = arith.constant 0 : i32
    %c0_i32_2 = arith.constant 0 : i32
    return %c0_i32, %c0_i32_0, %c0_i32_1 : i32, i32, i32
  }
  func.func @transform_6(%arg0: i32) -> (i32, i32) {
    %c0_i32 = arith.constant 0 : i32
    %c0_i32_0 = arith.constant 0 : i32
    %c0_i32_1 = arith.constant 0 : i32
    return %c0_i32, %c0_i32_0 : i32, i32
  }
  func.func @transform_7(%arg0: i32) -> (i32, i32, i32) {
    %c0_i32 = arith.constant 0 : i32
    %c0_i32_0 = arith.constant 0 : i32
    %c0_i32_1 = arith.constant 0 : i32
    return %arg0, %c0_i32, %c0_i32_0 : i32, i32, i32
  }
}

</mosaic_0001>

<bundles_post_ra>
// kernel: tpu_custom_call.1
= control target key start
LH: loop header
LB: loop body
LE: loop exit
PB: predicated region body
PF: predicated region fallthrough
CT: control target
= control target key end

     0   :  { %s1447_s0 = inlined_call_operand.hbm [shape: f32[2,8,256], index: 0, kind: input, shape index: {}]   ;;  %s1448_s1 = inlined_call_operand.vmem [shape: f32[8,72], index: 1, kind: input, shape index: {}]   ;;  %s1449_s2 = inlined_call_operand.vmem [shape: f32[8,1], index: 2, kind: input, shape index: {}]   ;;  %s1450_s3 = inlined_call_operand.vmem [shape: f32[8,72], index: 3, kind: input, shape index: {}]   ;;  %s1451_s4 = inlined_call_operand.vmem [shape: f32[8,1], index: 4, kind: input, shape index: {}]   ;;  %s1452_s5 = inlined_call_operand.hbm [shape: f32[9,8,256], index: 5, kind: input, shape index: {}]   ;;  %s1453_s6 = inlined_call_operand.hbm [shape: f32[8,8], index: 6, kind: input, shape index: {}]   ;;  %s1454_s7 = inlined_call_operand.hbm [shape: f32[2,8,256], index: 7, kind: output, shape index: {}]  }
   0x1   :  { %1455 = sst [smem:[#allocation12_spill]] %s1452_s5 }
   0x2   :  { %1456 = sst [smem:[#allocation13_spill]] %s1453_s6 }
   0x3   :  { %12 = vsyncpa [#allocation3], 0 }
   0x4   :  { %14 = vsyncpa [#allocation3 + $0x1], 0 }
   0x5   :  { %15 = vsyncpa [#allocation6], 0 }
   0x6   :  { %16 = vsyncpa [#allocation4], 0 }
   0x7   :  { %18 = vsyncpa [#allocation4 + $0x1], 0  ;;  %s1078_s24 = smov 0   ;;  %s1080_s25 = smov 0  }
   0x8   :  { %s1082_s26 = smov 0   ;;  %s1084_s27 = smov 0  }
   0x9 LB: > { %s1457_s5 = sld [smem:[#allocation12_spill]]  ;;  %s1102_s8 = sadd.s32 4294967295, %s1023_s27   ;;  %s1023_s27 = sphi %s1084_s27, %s1469_s27   ;;  %s1019_s26 = sphi %s1082_s26, %s1468_s26   ;;  %s1015_s25 = sphi %s1080_s25, %s1467_s25   ;;  %s1011_s24 = sphi %s1078_s24, %s1466_s24  }
   0xa   : > { %p758_p0 = scmp.ge.s32.totalorder %s1023_s27, 1  ;;  %p45_p1 = scmp.eq.s32.totalorder %s1102_s8, 0 }
   0xb   : > { %p207_p2 = scmp.lt.s32.totalorder %s1023_s27, 3  ;;  %s1025_s10 = smov [#allocation5]  }
   0xc   : > { %s232_s11 = sshll.u32 %s1025_s10, 4  ;;  %s1459_s6 = sld [smem:[#allocation13_spill]]  ;;  %s233_s11 = int_to_ptr.vmem [resolvable:$true] %s232_s11 }
   0xd   : > { %p1107_p3 = pnand %p758_p0, %p207_p2  ;;  %s1026_s15 = smov [#allocation7]  }
   0xe   : > { %s247_s16 = sshll.u32 %s1026_s15, 4  ;;  %s1027_s17 = smov 256   ;;  %s248_s16 = int_to_ptr.vmem [resolvable:$true] %s247_s16 }
   0xf   : > { %s230_s30 = sshll.u32 %s1457_s5, 4  ;;  %p795_p4 = pneg %p1107_p3  ;;  %s231_s30 = int_to_ptr.hbm [resolvable:$true] %s230_s30 }
  0x10   : > { %s1028_s18 = smov 16   ;;  %s757_s19 = sadd.s32 4294967294, %s1023_s27  }
  0x11   : > { %p796_p6 = pnand %p795_p4, %p45_p1  ;;  %s1121_s20 = sadd.s32 1, %s1023_s27  }
  0x12   : > { %s245_s14 = sshll.u32 %s1459_s6, 4  ;;  %s28_s21 = ssub.s32 %s1023_s27, %s1121_s20  ;;  %s246_s14 = int_to_ptr.hbm [resolvable:$true] %s245_s14 }
  0x13   : > { %798 = dma.hbm_to_vmem [thread:$0]  (!%p796_p6), %s231_s30, 2304, %s233_s11, [#allocation6], %s1027_s17, %s1027_s17, %s1028_s18  }
  0x14   : > { %801 = dma.hbm_to_vmem [thread:$0]  (!%p796_p6), %s246_s14, 128, %s248_s16, [#allocation6]  }
  0x15   : > { %s31_s22 = sadd.s32 1, %s1019_s26  ;;  %p29_p7 = scmp.eq.s32.totalorder %s28_s21, 0 }
  0x16   : > { %p38_p8 = scmp.ne.s32.totalorder %s1019_s26, %s1015_s25  ;;  %p39_p9 = scmp.eq.s32.totalorder %s1023_s27, 0 }
  0x17   : > { %p44_p10 = scmp.ne.s32.totalorder %s1015_s25, %s1011_s24  ;;  %p194_p13 = scmp.eq.s32.totalorder %s1102_s8, 1 }
  0x18   : > { %s1132_s23 = scalar_select %p29_p7, %s1019_s26, %s31_s22  }
  0x19   : > { %p1134_p11 = por %p39_p9, %p38_p8  ;;  %p1140_p12 = por %p45_p1, %p44_p10 }
  0x1a   : > { %p200_p0 = scmp.eq.s32.totalorder %s757_s19, 1  ;;  %p812_p2 = scmp.lt.s32.totalorder %s1023_s27, 2 }
  0x1b   : > { %s258_s30 = sand.u32 1, %s1019_s26   ;;  %p1147_p4 = por %p194_p13, %p38_p8 }
  0x1c   : > { %p1151_p6 = por %p200_p0, %p44_p10  ;;  %s762_s12 = sshll.u32 %s258_s30, 4 }
  0x1d   : > { %s781_s13 = sshll.u32 %s1023_s27, 4  ;;  %s262_s17 = scalar_lea.vmem [#allocation2], %s762_s12 }
  0x1e   : > { %s267_s16 = scalar_lea.hbm %s1447_s0, %s781_s13  ;;  %s271_s18 = sshll.u32 %s262_s17, 4  ;;  %s272_s18 = int_to_ptr.vmem [resolvable:$true] %s271_s18 }
  0x1f   : > { %s269_s21 = sshll.u32 %s267_s16, 4  ;;  %p1161_p7 = pnand %p812_p2, %p1134_p11  ;;  %s270_s21 = int_to_ptr.hbm [resolvable:$true] %s269_s21 }
  0x20   : > { %s259_s22 = scalar_lea.sflag [#allocation3], %s258_s30  ;;  %s923_s5 = sshra.s32 %s270_s21, 4  ;;  %s924_s5 = int_to_ptr.hbm [resolvable:$true] %s923_s5 }
  0x21   : > { %s925_s6 = scalar_lea.hbm %s924_s5, 16  ;;  %p927_p9 = pneg %p1161_p7 }
  0x22   : > { %p926_p8 = scmp.ne.s32.totalorder %s924_s5, %s925_s6  ;;  %s930_s14 = scalar_lea.hbm %s1447_s0, 32 }
  0x23   : > { %p931_p11 = scmp.lt.s32.totalorder %s924_s5, %s1447_s0  ;;  %p932_p0 = scmp.lt.s32.totalorder %s930_s14, %s925_s6 }
  0x24   : > { %p928_p10 = pnand %p927_p9, %p926_p8 }
  0x25   : > { %p933_p2 = por %p932_p0, %p931_p11 }
  0x26   : > { %p929_p13 = pneg %p928_p10 }
  0x28   : > { %p934_p5 = pnand %p933_p2, %p929_p13 }
  0x2a   : > { %937 = shalt.err (!%p934_p5)
}
  0x2b   : > { %805 = dma.hbm_to_vmem [thread:$0]  (!%p1161_p7), %s270_s21, 256, %s272_s18, %s259_s22  }
  0x2c   : > { %280 = sbr.rel (%p1107_p3) target bundleno = 639 (0x27f), region = 48  ;;  %s1178_s30 = sand.u32 (!%p1107_p3), 1, %s1015_s25  }
  0x2d   : > { %s766_s16 = sshll.u32 (!%p1107_p3), %s1178_s30, 4  ;;  %s283_s17 = scalar_lea.sflag (!%p1107_p3), [#allocation3], %s1178_s30 }
  0x2e   : > { %s286_s5 = scalar_lea.vmem (!%p1107_p3), [#allocation2], %s766_s16 }
  0x31   : > { %998 = dma.done.wait (%p1140_p12), %s283_s17, 256  }
  0x32   : > { %1000 = vsyncadd (%p1140_p12), %s283_s17, 4294967040 }
  0x33   : > { %1002 = dma.done.wait (%p45_p1), [#allocation6], 2432  }
  0x34   : > { %1004 = vsyncadd (%p45_p1), [#allocation6], 4294964864  ;;  %v1192_v0 = vld [vmem:[%s286_s5] sm:$0xff]  ;;  %v1196_v2 = vld [vmem:[%s286_s5 + $0x8] sm:$0xff]  ;;  %s1029_s6 = smov 112   ;;  %s1030_s9 = smov 111   ;;  %v368_v7 = vlaneseq }
  0x35   : > { %vm358_vm0 = vcmp.gt.f32.partialorder %v1192_v0, 0.0  ;;  %v360_v1 = vmul.f32 0.2, %v1192_v0  ;;  %v361_v4 = vmul.f32 0.2, %v1196_v2  ;;  %s1031_s29 = smov 113  }
  0x36   : > { %vm359_vm1 = vcmp.gt.f32.partialorder %v1196_v2, 0.0  ;;  %s1032_s18 = smov 127   ;;  %s1033_s21 = smov 1   ;;  %v1238_v10 = vand.u32 127, %v368_v7  ;;  %v1242_v12 = vld [vmem:[#allocation5 + $0x80] sm:$0xff]  ;;  %v1244_v13 = vld [vmem:[#allocation5 + $0x88] sm:$0xff] }
  0x37   : > { %v1199_v3 = vsel %vm358_vm0, %v1192_v0, %v360_v1  ;;  %v1210_v5 = vsel %vm359_vm1, %v1196_v2, %v361_v4  ;;  %s1034_s19 = smov 15   ;;  %s1035_s22 = smov 16   ;;  %v1255_v20 = vld [vmem:[#allocation5 + $0x70] sm:$0xff]  ;;  %v1257_v21 = vld [vmem:[#allocation5 + $0x78] sm:$0xff]  ;;  %v1265_v26 = vld [vmem:[#allocation5 + $0x60] sm:$0xff]  ;;  %v1037_v36 = vmov 0  }
  0x38   : > { %420 = vrot.lane.b32.xlu1 %v1199_v3, %s1029_s6  ;;  %429 = vrot.lane.b32.xlu0 %v1199_v3, %s1030_s9  ;;  %s1036_s12 = smov 17   ;;  %vm424_vm2 = vcmp.lt.s32.totalorder %v1238_v10, 112  ;;  %vm433_vm3 = vcmp.lt.s32.totalorder %v1238_v10, 111  ;;  %vm415_vm4 = vcmp.lt.s32.totalorder %v1238_v10, 113  ;;  %v1267_v27 = vld [vmem:[#allocation5 + $0x68] sm:$0xff]  ;;  %vm406_vm5 = vcmp.lt.s32.totalorder %v1238_v10, 127 }
  0x39   : > { %411 = vrot.lane.b32.xlu2 %v1199_v3, %s1031_s29  ;;  %v329_v33 = vld [vmem:[%s1449_s2] sm:$0xff]  ;;  %v1277_v34 = vld [vmem:[#allocation5 + $0x50] sm:$0xff]  ;;  %v1279_v35 = vld [vmem:[#allocation5 + $0x58] sm:$0xff]  ;;  %861 = vset.pattern.permute.xlu1 %v1037_v36  ;;  %vm397_vm6 = vcmp.lt.s32.totalorder %v1238_v10, 1  ;;  %vm388_vm7 = vcmp.lt.s32.totalorder %v1238_v10, 15  ;;  %vm379_vm8 = vcmp.lt.s32.totalorder %v1238_v10, 16 }
  0x3a   : > { %862 = vset.pattern.permute.xlu0 %v1037_v36  ;;  %v1290_v43 = vld [vmem:[#allocation5 + $0x30] sm:$0xff]  ;;  %v1293_v45 = vld [vmem:[#allocation5 + $0x38] sm:$0xff]  ;;  %v1295_v46 = vld [vmem:[#allocation5 + $0x20] sm:$0xff]  ;;  %vm370_vm9 = vcmp.lt.s32.totalorder %v1238_v10, 17  ;;  %vm443_vm10 = vcmask 588800   ;;  %vm605_vm13 = vcmask 64512  }
  0x3b   : > { %v1297_v47 = vld [vmem:[#allocation5 + $0x28] sm:$0xff]  ;;  %v1312_v58 = vld [vmem:[#allocation5 + $0x10] sm:$0xff]  ;;  %v1314_v59 = vld [vmem:[#allocation5 + $0x18] sm:$0xff] }
  0x40   : > { %422 = vrot.lane.b32.xlu1 %v1210_v5, %s1029_s6  ;;  %431 = vrot.lane.b32.xlu0 %v1210_v5, %s1030_s9 }
  0x41   : > { %413 = vrot.lane.b32.xlu2 %v1210_v5, %s1031_s29 }
  0x48   : > { %404 = vrot.lane.b32.xlu1 %v1210_v5, %s1032_s18  ;;  %402 = vrot.lane.b32.xlu0 %v1199_v3, %s1032_s18 }
  0x49   : > { %393 = vrot.lane.b32.xlu2 %v1199_v3, %s1033_s21 }
  0x50   : > { %384 = vrot.lane.b32.xlu1 %v1199_v3, %s1034_s19  ;;  %395 = vrot.lane.b32.xlu0 %v1210_v5, %s1033_s21 }
  0x51   : > { %386 = vrot.lane.b32.xlu2 %v1210_v5, %s1034_s19 }
  0x58   : > { %377 = vrot.lane.b32.xlu1 %v1210_v5, %s1035_s22  ;;  %375 = vrot.lane.b32.xlu0 %v1199_v3, %s1035_s22 }
  0x59   : > { %364 = vrot.lane.b32.xlu2 %v1199_v3, %s1036_s12 }
  0x60   : > { %366 = vrot.lane.b32.xlu0 %v1210_v5, %s1036_s12  ;;  %440 = vperm.xlu1 %861, %v329_v33  }
  0x93   : > { %v412_v6 = vpop.permute.xlu2 %411 }
  0x9b   : > { %v414_v11 = vpop.permute.xlu2 %413 }
  0x9c   : > { %v416_v24 = vsel %vm415_vm4, %v412_v6, %v414_v11  ;;  %v417_v25 = vsel %vm415_vm4, %v414_v11, %v412_v6  ;;  %v1325_v6 = vld [vmem:[#allocation5 + $0x8] sm:$0xff] }
  0x9d   : > { %v418_v31 = vmul.f32 %v416_v24, %v1265_v26  ;;  %v419_v32 = vmul.f32 %v417_v25, %v1267_v27 }
  0xa3   : > { %v394_v30 = vpop.permute.xlu2 %393 }
  0xaa   : > { %v421_v8 = vpop.permute.xlu1 %420  ;;  %v430_v9 = vpop.permute.xlu0 %429 }
  0xab   : > { %v387_v44 = vpop.permute.xlu2 %386 }
  0xb2   : > { %v423_v14 = vpop.permute.xlu1 %422  ;;  %v432_v15 = vpop.permute.xlu0 %431 }
  0xb3   : > { %v425_v16 = vsel %vm424_vm2, %v421_v8, %v423_v14  ;;  %v426_v17 = vsel %vm424_vm2, %v423_v14, %v421_v8  ;;  %v434_v18 = vsel %vm433_vm3, %v430_v9, %v432_v15  ;;  %v435_v19 = vsel %vm433_vm3, %v432_v15, %v430_v9  ;;  %v365_v4 = vpop.permute.xlu2 %364  ;;  %v328_v15 = vld [vmem:[%s1448_s1] sm:$0xff] }
  0xb4   : > { %v436_v22 = vmul.f32 %v434_v18, %v1242_v12  ;;  %v437_v23 = vmul.f32 %v435_v19, %v1244_v13  ;;  %v427_v28 = vmul.f32 %v425_v16, %v1255_v20  ;;  %v428_v29 = vmul.f32 %v426_v17, %v1257_v21 }
  0xb6   : > { %454 = vmatpush.msra.mxu0 %v436_v22  ;;  %474 = vmatpush.msra.mxu1 %v437_v23 }
  0xb8   : > { %455 = vmatpush.msra.mxu0 %v427_v28  ;;  %475 = vmatpush.msra.mxu1 %v428_v29 }
  0xba   : > { %v405_v37 = vpop.permute.xlu1 %404  ;;  %v403_v38 = vpop.permute.xlu0 %402  ;;  %456 = vmatpush.msra.mxu0 %v418_v31  ;;  %476 = vmatpush.msra.mxu1 %v419_v32 }
  0xbb   : > { %v407_v39 = vsel %vm406_vm5, %v403_v38, %v405_v37  ;;  %v408_v40 = vsel %vm406_vm5, %v405_v37, %v403_v38 }
  0xbc   : > { %v409_v41 = vmul.f32 %v407_v39, %v1277_v34  ;;  %v410_v42 = vmul.f32 %v408_v40, %v1279_v35 }
  0xbe   : > { %457 = vmatpush.msra.mxu0 %v409_v41  ;;  %477 = vmatpush.msra.mxu1 %v410_v42  ;;  %v332_v42 = vld [vmem:[#allocation7] sm:$0xff] }
  0xc0   : > { %458 = vmatpush.msra.mxu0 %v1199_v3  ;;  %478 = vmatpush.msra.mxu1 %v1210_v5  ;;  %v1323_v5 = vld [vmem:[#allocation5] sm:$0xff] }
  0xc2   : > { %v385_v48 = vpop.permute.xlu1 %384  ;;  %v396_v49 = vpop.permute.xlu0 %395 }
  0xc3   : > { %v398_v50 = vsel %vm397_vm6, %v394_v30, %v396_v49  ;;  %v399_v51 = vsel %vm397_vm6, %v396_v49, %v394_v30  ;;  %v389_v52 = vsel %vm388_vm7, %v385_v48, %v387_v44  ;;  %v390_v53 = vsel %vm388_vm7, %v387_v44, %v385_v48  ;;  %v331_v44 = vld [vmem:[%s1451_s4] sm:$0xff] }
  0xc4   : > { %v400_v54 = vmul.f32 %v399_v51, %v1290_v43  ;;  %v401_v55 = vmul.f32 %v398_v50, %v1293_v45  ;;  %v391_v56 = vmul.f32 %v390_v53, %v1295_v46  ;;  %v392_v57 = vmul.f32 %v389_v52, %v1297_v47 }
  0xc6   : > { %459 = vmatpush.msra.mxu0 %v400_v54  ;;  %479 = vmatpush.msra.mxu1 %v401_v55 }
  0xc8   : > { %460 = vmatpush.msra.mxu0 %v391_v56  ;;  %480 = vmatpush.msra.mxu1 %v392_v57 }
  0xca   : > { %v378_v60 = vpop.permute.xlu1 %377  ;;  %v376_v61 = vpop.permute.xlu0 %375 }
  0xcb   : > { %v380_v62 = vsel %vm379_vm8, %v376_v61, %v378_v60  ;;  %v381_v63 = vsel %vm379_vm8, %v378_v60, %v376_v61 }
  0xcc   : > { %v382_v1 = vmul.f32 %v381_v63, %v1312_v58  ;;  %v383_v3 = vmul.f32 %v380_v62, %v1314_v59 }
  0xce   : > { %461 = vmatpush.msra.mxu0 %v382_v1  ;;  %481 = vmatpush.msra.mxu1 %v383_v3 }
  0xd2   : > { %v367_v7 = vpop.permute.xlu0 %366  ;;  %v441_v16 = vpop.permute.xlu1 %440 }
  0xd3   : > { %v371_v8 = vsel %vm370_vm9, %v365_v4, %v367_v7  ;;  %v372_v9 = vsel %vm370_vm9, %v367_v7, %v365_v4 }
  0xd4   : > { %v373_v11 = vmul.f32 %v372_v9, %v1323_v5  ;;  %v374_v14 = vmul.f32 %v371_v8, %v1325_v6 }
  0xd6   : > { %462 = vmatpush.msra.mxu0 %v373_v11  ;;  %482 = vmatpush.msra.mxu1 %v374_v14 }
  0xd7   : > { %770 = vmatmul.msk.f32.vlgmr.msra.gmra.mxu0 %vm443_vm10, %v328_v15  ;;  %771 = vmatmul.msk.f32.vlgmr.msra.gmra.mxu1 %vm443_vm10, %v328_v15 }
  0xd8   : > { %624 = vmatpush.msrb.mxu0 %v1192_v0  ;;  %644 = vmatpush.msrb.mxu1 %v1196_v2 }
  0xdf   : > { %774 = vmatmul.msk.f32.vlgmr.msrb.gmra.mxu0 %vm605_vm13, %v332_v42  ;;  %775 = vmatmul.msk.f32.vlgmr.msrb.gmra.mxu1 %vm605_vm13, %v332_v42 }
 0x154   : > { %v464_v17 = vpop.f32.mrf.mxu0  ;;  %v484_v18 = vpop.f32.mrf.mxu1 }
 0x155   : > { %v465_v19 = vadd.f32 %v464_v17, %v441_v16  ;;  %v485_v22 = vadd.f32 %v484_v18, %v441_v16  ;;  %v330_v16 = vld [vmem:[%s1450_s3] sm:$0xff] }
 0x157   : > { %vm487_vm11 = vcmp.gt.f32.partialorder %v465_v19, 0.0  ;;  %v489_v23 = vmul.f32 0.2, %v465_v19  ;;  %vm488_vm12 = vcmp.gt.f32.partialorder %v485_v22, 0.0  ;;  %v490_v24 = vmul.f32 0.2, %v485_v22 }
 0x159   : > { %v491_v25 = vsel %vm487_vm11, %v465_v19, %v489_v23  ;;  %v492_v28 = vsel %vm488_vm12, %v485_v22, %v490_v24 }
 0x15a   : > { %551 = vrot.lane.b32.xlu0 %v492_v28, %s1030_s9  ;;  %541 = vrot.lane.b32.xlu1 %v491_v25, %s1029_s6 }
 0x15b   : > { %549 = vrot.lane.b32.xlu2 %v491_v25, %s1030_s9 }
 0x162   : > { %533 = vrot.lane.b32.xlu0 %v491_v25, %s1031_s29  ;;  %535 = vrot.lane.b32.xlu1 %v492_v28, %s1031_s29  ;;  %s782_s29 = sshll.u32 %s1102_s8, 4  ;;  %s652_s8 = scalar_lea.sflag [#allocation4], %s1178_s30 }
 0x163   : > { %543 = vrot.lane.b32.xlu2 %v492_v28, %s1029_s6 }
 0x16a   : > { %527 = vrot.lane.b32.xlu0 %v492_v28, %s1032_s18  ;;  %517 = vrot.lane.b32.xlu1 %v491_v25, %s1033_s21 }
 0x16b   : > { %525 = vrot.lane.b32.xlu2 %v491_v25, %s1032_s18 }
 0x172   : > { %509 = vrot.lane.b32.xlu0 %v491_v25, %s1034_s19  ;;  %511 = vrot.lane.b32.xlu1 %v492_v28, %s1034_s19  ;;  %s663_s19 = scalar_lea.hbm %s1454_s7, %s782_s29 }
 0x173   : > { %519 = vrot.lane.b32.xlu2 %v492_v28, %s1033_s21  ;;  %s667_s13 = sshll.u32 %s663_s19, 4  ;;  %s668_s13 = int_to_ptr.hbm [resolvable:$true] %s667_s13 }
 0x174   : > { %s967_s14 = sshra.s32 %s668_s13, 4  ;;  %s968_s14 = int_to_ptr.hbm [resolvable:$true] %s967_s14 }
 0x175   : > { %s969_s15 = scalar_lea.hbm %s968_s14, 16  ;;  %p974_p12 = scmp.lt.s32.totalorder %s968_s14, %s1454_s7 }
 0x176   : > { %p970_p1 = scmp.ne.s32.totalorder %s968_s14, %s969_s15 }
 0x178   : > { %p971_p3 = pnand %p970_p1, %p1147_p4 }
 0x17a   : > { %503 = vrot.lane.b32.xlu0 %v492_v28, %s1035_s22  ;;  %493 = vrot.lane.b32.xlu1 %v491_v25, %s1036_s12  ;;  %p972_p5 = pneg %p971_p3 }
 0x17b   : > { %501 = vrot.lane.b32.xlu2 %v491_v25, %s1035_s22  ;;  %s327_s22 = scalar_lea.vmem [#allocation8], %s766_s16  ;;  %s973_s16 = scalar_lea.hbm %s1454_s7, 32 }
 0x17c   : > { %p975_p7 = scmp.lt.s32.totalorder %s973_s16, %s969_s15 }
 0x17e   : > { %p976_p8 = por %p975_p7, %p974_p12 }
 0x180   : > { %p977_p9 = pnand %p976_p8, %p972_p5 }
 0x182   : > { %559 = vperm.xlu0 %862, %v331_v44  }
 0x183   : > { %495 = vrot.lane.b32.xlu2 %v492_v28, %s1036_s12  ;;  %s665_s12 = sshll.u32 %s327_s22, 4  ;;  %s666_s12 = int_to_ptr.vmem [resolvable:$true] %s665_s12 }
 0x1b5   : > { %v550_v0 = vpop.permute.xlu2 %549 }
 0x1bd   : > { %v544_v2 = vpop.permute.xlu2 %543 }
 0x1c5   : > { %v526_v31 = vpop.permute.xlu2 %525 }
 0x1cc   : > { %v552_v29 = vpop.permute.xlu0 %551  ;;  %v542_v30 = vpop.permute.xlu1 %541 }
 0x1cd   : > { %v545_v32 = vsel %vm424_vm2, %v542_v30, %v544_v2  ;;  %v546_v33 = vsel %vm424_vm2, %v544_v2, %v542_v30  ;;  %v553_v36 = vsel %vm433_vm3, %v550_v0, %v552_v29  ;;  %v554_v37 = vsel %vm433_vm3, %v552_v29, %v550_v0  ;;  %v520_v50 = vpop.permute.xlu2 %519 }
 0x1ce   : > { %v555_v38 = vmul.f32 %v553_v36, %v1242_v12  ;;  %v556_v39 = vmul.f32 %v554_v37, %v1244_v13  ;;  %v547_v40 = vmul.f32 %v545_v32, %v1255_v20  ;;  %v548_v41 = vmul.f32 %v546_v33, %v1257_v21 }
 0x1d0   : > { %572 = vmatpush.msra.mxu2 %v555_v38  ;;  %592 = vmatpush.msra.mxu3 %v556_v39 }
 0x1d2   : > { %573 = vmatpush.msra.mxu2 %v547_v40  ;;  %593 = vmatpush.msra.mxu3 %v548_v41 }
 0x1d4   : > { %v534_v48 = vpop.permute.xlu0 %533  ;;  %v536_v49 = vpop.permute.xlu1 %535 }
 0x1d5   : > { %v537_v12 = vsel %vm415_vm4, %v534_v48, %v536_v49  ;;  %v538_v13 = vsel %vm415_vm4, %v536_v49, %v534_v48  ;;  %v502_v57 = vpop.permute.xlu2 %501 }
 0x1d6   : > { %v539_v20 = vmul.f32 %v537_v12, %v1265_v26  ;;  %v540_v21 = vmul.f32 %v538_v13, %v1267_v27 }
 0x1d8   : > { %574 = vmatpush.msra.mxu2 %v539_v20  ;;  %594 = vmatpush.msra.mxu3 %v540_v21 }
 0x1dc   : > { %v528_v51 = vpop.permute.xlu0 %527  ;;  %v518_v52 = vpop.permute.xlu1 %517 }
 0x1dd   : > { %v529_v53 = vsel %vm406_vm5, %v526_v31, %v528_v51  ;;  %v530_v54 = vsel %vm406_vm5, %v528_v51, %v526_v31  ;;  %v521_v26 = vsel %vm397_vm6, %v518_v52, %v520_v50  ;;  %v522_v27 = vsel %vm397_vm6, %v520_v50, %v518_v52  ;;  %v496_v4 = vpop.permute.xlu2 %495 }
 0x1de   : > { %v531_v55 = vmul.f32 %v529_v53, %v1277_v34  ;;  %v532_v56 = vmul.f32 %v530_v54, %v1279_v35  ;;  %v523_v60 = vmul.f32 %v522_v27, %v1290_v43  ;;  %v524_v61 = vmul.f32 %v521_v26, %v1293_v45 }
 0x1e0   : > { %575 = vmatpush.msra.mxu2 %v531_v55  ;;  %595 = vmatpush.msra.mxu3 %v532_v56 }
 0x1e2   : > { %576 = vmatpush.msra.mxu2 %v491_v25  ;;  %596 = vmatpush.msra.mxu3 %v492_v28 }
 0x1e4   : > { %v510_v62 = vpop.permute.xlu0 %509  ;;  %v512_v63 = vpop.permute.xlu1 %511  ;;  %577 = vmatpush.msra.mxu2 %v523_v60  ;;  %597 = vmatpush.msra.mxu3 %v524_v61 }
 0x1e5   : > { %v513_v34 = vsel %vm388_vm7, %v510_v62, %v512_v63  ;;  %v514_v35 = vsel %vm388_vm7, %v512_v63, %v510_v62 }
 0x1e6   : > { %v515_v1 = vmul.f32 %v514_v35, %v1295_v46  ;;  %v516_v3 = vmul.f32 %v513_v34, %v1297_v47 }
 0x1e8   : > { %578 = vmatpush.msra.mxu2 %v515_v1  ;;  %598 = vmatpush.msra.mxu3 %v516_v3 }
 0x1ec   : > { %v504_v43 = vpop.permute.xlu0 %503  ;;  %v494_v7 = vpop.permute.xlu1 %493 }
 0x1ed   : > { %v505_v45 = vsel %vm379_vm8, %v502_v57, %v504_v43  ;;  %v506_v8 = vsel %vm379_vm8, %v504_v43, %v502_v57  ;;  %v497_v9 = vsel %vm370_vm9, %v494_v7, %v496_v4  ;;  %v498_v46 = vsel %vm370_vm9, %v496_v4, %v494_v7 }
 0x1ee   : > { %v507_v47 = vmul.f32 %v506_v8, %v1312_v58  ;;  %v508_v11 = vmul.f32 %v505_v45, %v1314_v59  ;;  %v499_v14 = vmul.f32 %v498_v46, %v1323_v5  ;;  %v500_v15 = vmul.f32 %v497_v9, %v1325_v6  ;;  %v626_v58 = vpop.f32.mrf.mxu0  ;;  %v646_v59 = vpop.f32.mrf.mxu1 }
 0x1f0   : > { %579 = vmatpush.msra.mxu2 %v507_v47  ;;  %599 = vmatpush.msra.mxu3 %v508_v11 }
 0x1f2   : > { %580 = vmatpush.msra.mxu2 %v499_v14  ;;  %600 = vmatpush.msra.mxu3 %v500_v15 }
 0x1f3   : > { %772 = vmatmul.msk.f32.vlgmr.msra.gmra.mxu2 %vm443_vm10, %v330_v16  ;;  %773 = vmatmul.msk.f32.vlgmr.msra.gmra.mxu3 %vm443_vm10, %v330_v16 }
 0x1f4   : > { %v560_v10 = vpop.permute.xlu0 %559 }
 0x276   : > { %v582_v5 = vpop.f32.mrf.mxu2  ;;  %v602_v6 = vpop.f32.mrf.mxu3 }
 0x277   : > { %v583_v17 = vadd.f32 %v582_v5, %v560_v10  ;;  %v603_v18 = vadd.f32 %v602_v6, %v560_v10 }
 0x279   : > { %v627_v19 = vadd.f32 %v626_v58, %v583_v17  ;;  %v647_v22 = vadd.f32 %v646_v59, %v603_v18 }
 0x27b   : > { %649 = vst [vmem:[%s327_s22] sm:$0xff] %v627_v19 }
 0x27c   : > { %650 = vst [vmem:[%s327_s22 + $0x8] sm:$0xff] %v647_v22 }
 0x27d   : > { %980 = shalt.err (!%p977_p9)
}
 0x27e   : > { %793 = dma.vmem_to_hbm [thread:$0]  (%p1147_p4), %s666_s12, 256, %s668_s13, %s652_s8  }
 0x27f PF: > { %s679_s30 = sand.u32 1, %s1011_s24   ;;  %p1465_p10 = scmp.ge.s32.totalorder %s1023_s27, 2 }
 0x280   : > { %s680_s9 = scalar_lea.sflag [#allocation4], %s679_s30 }
 0x281   : > { %p807_p13 = pnand %p1465_p10, %p1151_p6 }
 0x283   : > { %p808_p11 = pneg %p807_p13 }
 0x285   : > { %1006 = dma.done.wait (%p808_p11), %s680_s9, 256  }
 0x286   : > { %1008 = vsyncadd (%p808_p11), %s680_s9, 4294967040  ;;  %p21_p0 = scmp.ge.s32.totalorder %s1121_s20, 4   ;;  %s1466_s24 = smov %s1015_s25 }
 0x287   : > { %s1467_s25 = smov %s1019_s26  ;;  %s1468_s26 = smov %s1132_s23 }
 0x288   : > { %s1469_s27 = smov %s1121_s20  ;;  %23 = sbr.rel (!%p21_p0) target bundleno = 9 (0x9), region = 108 }
 0x28d   :  { %686 = vsyncpa [#allocation3], 1 }
 0x28e   :  { %688 = vsyncpa [#allocation3 + $0x1], 1 }
 0x28f   :  { %689 = vsyncpa [#allocation6], 1 }
 0x290   :  { %690 = vsyncpa [#allocation4], 1 }
 0x291   :  { %692 = vsyncpa [#allocation4 + $0x1], 1 }

</bundles_post_ra>
